<compile_context>
chip_gen: v6e
topology: v6e:2x2x1
jax: 0.10.0
libtpu: 0.0.40
codegen_flags: <defaults>
</compile_context>

<pallas_src>
import functools

import jax
import jax.numpy as jnp
from jax.experimental import pallas as pl
from jax.experimental.pallas import tpu as pltpu

H = 64  # hidden width, fixed by the PyTorch module


def _mlp_kernel(x_ref, w1_ref, b1_ref, w2_ref, b2_ref, w3_ref, b3_ref, o_ref,
                *, sigma: bool):
    xT = x_ref[...]                                                      # (d, TM)
    # layer 1: (H, d) @ (d, TM) -> (H, TM) on the MXU
    h1 = jnp.dot(w1_ref[...], xT, preferred_element_type=jnp.float32)
    h1 = jnp.maximum(h1 + b1_ref[...], 0.0)                              # (H,1) bias bcast + ReLU
    # layer 2: (H, H) @ (H, TM) -> (H, TM)
    h2 = jnp.dot(w2_ref[...], h1, preferred_element_type=jnp.float32)
    h2 = jnp.maximum(h2 + b2_ref[...], 0.0)
    # layer 3 (output width 1): VPU multiply + cross-sublane reduce instead of a width-1 MXU matmul
    y = jnp.sum(h2 * w3_ref[...], axis=0, keepdims=True)                 # (1, TM), lane-dense
    y = y + b3_ref[0]                                                    # scalar bias from SMEM
    if sigma:
        y = jnp.maximum(y, 0.0) + 0.001                                  # trailing ReLU, then perturb
    o_ref[...] = y.astype(o_ref.dtype)


def mlp_forward(x, params, *, sigma: bool = False, tile_m: int = 512):
    """Pallas forward pass of the MLP. x: (N, d) float32, returns (N, 1) float32."""
    w1, b1, w2, b2, w3, b3 = params
    N, d = x.shape

    tile_m = max(128, (tile_m // 128) * 128)          # lane-dense batch tile (multiple of 8 & 128)
    n_tiles = pl.cdiv(N, tile_m)
    if n_tiles == 1 and N > 256:
        # keep >=2 grid steps so v7x's two TensorCores both get work
        tile_m = (((N + 1) // 2) + 127) // 128 * 128
        n_tiles = pl.cdiv(N, tile_m)
    n_pad = n_tiles * tile_m

    # Feature-major operands; ragged tail is zero-padded and sliced off after the call.
    xT = jnp.pad(x.T, ((0, 0), (0, n_pad - N)))       # (d, n_pad)
    w1T = w1.T                                         # (H, d)
    w2T = w2.T                                         # (H, H)
    b1c = b1.reshape(H, 1)
    b2c = b2.reshape(H, 1)
    w3c = w3.reshape(H, 1)
    b3s = b3.reshape(1).astype(jnp.float32)            # scalar bias -> SMEM

    kernel = functools.partial(_mlp_kernel, sigma=sigma)

    flops = 2 * n_pad * (d * H + H * H + H)
    bytes_accessed = 4 * (xT.size + w1.size + w2.size + w3.size
                          + b1.size + b2.size + b3.size + n_pad)

    out = pl.pallas_call(
        kernel,
        out_shape=jax.ShapeDtypeStruct((n_tiles, tile_m), jnp.float32),
        grid_spec=pltpu.PrefetchScalarGridSpec(
            num_scalar_prefetch=0,
            grid=(n_tiles,),
            in_specs=[
                pl.BlockSpec((d, tile_m), lambda i: (0, i)),        # x^T batch tile
                pl.BlockSpec((H, d), lambda i: (0, 0)),             # W1^T (resident)
                pl.BlockSpec((H, 1), lambda i: (0, 0)),             # b1 column
                pl.BlockSpec((H, H), lambda i: (0, 0)),             # W2^T (resident)
                pl.BlockSpec((H, 1), lambda i: (0, 0)),             # b2 column
                pl.BlockSpec((H, 1), lambda i: (0, 0)),             # W3 column
                pl.BlockSpec(memory_space=pltpu.MemorySpace.SMEM),  # b3 scalar
            ],
            out_specs=pl.BlockSpec((1, tile_m), lambda i: (i, 0)),  # lane-dense output row
        ),
        compiler_params=pltpu.CompilerParams(
            dimension_semantics=("parallel",)),                     # megacore-shard grid on v7x
        cost_estimate=pl.CostEstimate(
            flops=flops, transcendentals=0, bytes_accessed=bytes_accessed),
    )(xT, w1T, b1c, w2T, b2c, w3c, b3s)

    return out.reshape(n_pad, 1)[:N]


def init_params(key, d):
    """Deterministic init mimicking nn.Linear (uniform +-1/sqrt(fan_in)), layout (in, out)."""
    ks = jax.random.split(key, 6)
    def lin(kw, kb, fan_in, fan_out):
        bound = 1.0 / jnp.sqrt(fan_in)
        w = jax.random.uniform(kw, (fan_in, fan_out), jnp.float32, -bound, bound)
        b = jax.random.uniform(kb, (1, fan_out), jnp.float32, -bound, bound)
        return w, b
    w1, b1 = lin(ks[0], ks[1], d, H)
    w2, b2 = lin(ks[2], ks[3], H, H)
    w3, b3 = lin(ks[4], ks[5], H, 1)
    return (w1, b1, w2, b2, w3, b3)


def mlp_reference(x, params, *, sigma: bool = False):
    w1, b1, w2, b2, w3, b3 = params
    h = jnp.maximum(x @ w1 + b1, 0.0)
    h = jnp.maximum(h @ w2 + b2, 0.0)
    y = h @ w3 + b3
    if sigma:
        y = jnp.maximum(y, 0.0)
    return y + (0.001 if sigma else 0.0)


if __name__ == "__main__":
    key = jax.random.PRNGKey(0)
    k_x, k_p, k_x2 = jax.random.split(key, 3)

    N, d = 16, 8  # small batch of feature vectors, matches MLP(d)
    x = jax.random.normal(k_x, (N, d), jnp.float32)
    params = init_params(k_p, d)

    # sigma=False (default MLP)
    out = jax.block_until_ready(mlp_forward(x, params, sigma=False))
    ref = mlp_reference(x, params, sigma=False)
    assert out.shape == (N, 1)
    assert jnp.allclose(out, ref, atol=1e-5, rtol=1e-5)

    # sigma=True variant (trailing ReLU + 0.001 perturbation)
    out_s = jax.block_until_ready(mlp_forward(x, params, sigma=True))
    ref_s = mlp_reference(x, params, sigma=True)
    assert jnp.allclose(out_s, ref_s, atol=1e-5, rtol=1e-5)

    # multi-tile + ragged tail (exercises padding path and >=2 grid steps for v7x megacore)
    N2 = 1000
    x2 = jax.random.normal(k_x2, (N2, d), jnp.float32)
    out2 = jax.block_until_ready(mlp_forward(x2, params, sigma=False, tile_m=512))
    ref2 = mlp_reference(x2, params, sigma=False)
    assert out2.shape == (N2, 1)
    assert jnp.allclose(out2, ref2, atol=1e-5, rtol=1e-5)

    print("KERNEL_OK")
</pallas_src>

<mosaic_0001>
module attributes {stable_mosaic.version = 11 : i64} {
  func.func @_mlp_kernel(%arg0: i32, %arg1: memref<8x512xf32, #tpu.memory_space<vmem>>, %arg2: memref<64x8xf32, #tpu.memory_space<vmem>>, %arg3: memref<64x1xf32, #tpu.memory_space<vmem>>, %arg4: memref<64x64xf32, #tpu.memory_space<vmem>>, %arg5: memref<64x1xf32, #tpu.memory_space<vmem>>, %arg6: memref<64x1xf32, #tpu.memory_space<vmem>>, %arg7: memref<1xf32, #tpu.memory_space<smem>>, %arg8: memref<1x512xf32, #tpu.memory_space<vmem>>) attributes {dimension_semantics = [#tpu.dimension_semantics<parallel>], iteration_bounds = array<i64: 1>, scalar_prefetch = 0 : i64, scratch_operands = 0 : i64, tpu.core_type = #tpu.core_type<tc>, window_params = [{transform_indices = @transform_0, window_bounds = array<i64: 8, 512>}, {pipeline_mode = #tpu.pipeline_mode<synchronous>, transform_indices = @transform_1, window_bounds = array<i64: 64, 8>}, {pipeline_mode = #tpu.pipeline_mode<synchronous>, transform_indices = @transform_2, window_bounds = array<i64: 64, 1>}, {pipeline_mode = #tpu.pipeline_mode<synchronous>, transform_indices = @transform_3, window_bounds = array<i64: 64, 64>}, {pipeline_mode = #tpu.pipeline_mode<synchronous>, transform_indices = @transform_4, window_bounds = array<i64: 64, 1>}, {pipeline_mode = #tpu.pipeline_mode<synchronous>, transform_indices = @transform_5, window_bounds = array<i64: 64, 1>}, {transform_indices = @transform_6, window_bounds = array<i64: 1>}, {transform_indices = @transform_7, window_bounds = array<i64: 1, 512>}]} {
    %c0 = arith.constant 0 : index
    %c0_0 = arith.constant 0 : index
    %0 = vector.load %arg1[%c0, %c0_0] : memref<8x512xf32, #tpu.memory_space<vmem>>, vector<8x512xf32>
    %c0_1 = arith.constant 0 : index
    %c0_2 = arith.constant 0 : index
    %1 = vector.load %arg2[%c0_1, %c0_2] : memref<64x8xf32, #tpu.memory_space<vmem>>, vector<64x8xf32>
    %cst = arith.constant dense<0.000000e+00> : vector<64x512xf32>
    %2 = tpu.matmul %1, %0, %cst {dimension_numbers = #tpu.dot_dimension_numbers<[1], [0], [0], [1], [0, 0, 1, 1], [], []>} : vector<64x8xf32>, vector<8x512xf32>, vector<64x512xf32> -> vector<64x512xf32>
    %c0_3 = arith.constant 0 : index
    %c0_4 = arith.constant 0 : index
    %3 = vector.load %arg3[%c0_3, %c0_4] : memref<64x1xf32, #tpu.memory_space<vmem>>, vector<64x1xf32>
    %4 = vector.broadcast %3 : vector<64x1xf32> to vector<64x512xf32>
    %5 = arith.addf %2, %4 : vector<64x512xf32>
    %cst_5 = arith.constant 0.000000e+00 : f32
    %6 = vector.broadcast %cst_5 : f32 to vector<64x512xf32>
    %7 = arith.maximumf %5, %6 : vector<64x512xf32>
    %c0_6 = arith.constant 0 : index
    %c0_7 = arith.constant 0 : index
    %8 = vector.load %arg4[%c0_6, %c0_7] : memref<64x64xf32, #tpu.memory_space<vmem>>, vector<64x64xf32>
    %cst_8 = arith.constant dense<0.000000e+00> : vector<64x512xf32>
    %9 = tpu.matmul %8, %7, %cst_8 {dimension_numbers = #tpu.dot_dimension_numbers<[1], [0], [0], [1], [0, 0, 1, 1], [], []>} : vector<64x64xf32>, vector<64x512xf32>, vector<64x512xf32> -> vector<64x512xf32>
    %c0_9 = arith.constant 0 : index
    %c0_10 = arith.constant 0 : index
    %10 = vector.load %arg5[%c0_9, %c0_10] : memref<64x1xf32, #tpu.memory_space<vmem>>, vector<64x1xf32>
    %11 = vector.broadcast %10 : vector<64x1xf32> to vector<64x512xf32>
    %12 = arith.addf %9, %11 : vector<64x512xf32>
    %cst_11 = arith.constant 0.000000e+00 : f32
    %13 = vector.broadcast %cst_11 : f32 to vector<64x512xf32>
    %14 = arith.maximumf %12, %13 : vector<64x512xf32>
    %c0_12 = arith.constant 0 : index
    %c0_13 = arith.constant 0 : index
    %15 = vector.load %arg6[%c0_12, %c0_13] : memref<64x1xf32, #tpu.memory_space<vmem>>, vector<64x1xf32>
    %16 = vector.broadcast %15 : vector<64x1xf32> to vector<64x512xf32>
    %17 = arith.mulf %14, %16 : vector<64x512xf32>
    %cst_14 = arith.constant dense<0.000000e+00> : vector<512xf32>
    %18 = vector.multi_reduction <add>, %17, %cst_14 [0] : vector<64x512xf32> to vector<512xf32>
    %19 = vector.shape_cast %18 : vector<512xf32> to vector<1x512xf32>
    %c0_15 = arith.constant 0 : index
    %20 = memref.load %arg7[%c0_15] : memref<1xf32, #tpu.memory_space<smem>>
    %21 = vector.broadcast %20 : f32 to vector<1x512xf32>
    %22 = arith.addf %19, %21 : vector<1x512xf32>
    %c0_16 = arith.constant 0 : index
    %c0_17 = arith.constant 0 : index
    %23 = vector.load %arg8[%c0_16, %c0_17] : memref<1x512xf32, #tpu.memory_space<vmem>>, vector<1x512xf32>
    tpu.vector_store %arg8[%c0_16, %c0_17], %22 {strides = array<i32>} : memref<1x512xf32, #tpu.memory_space<vmem>>, vector<1x512xf32>,
    return
  }
  func.func @transform_0(%arg0: i32) -> (i32, i32) {
    %c0_i32 = arith.constant 0 : i32
    %c0_i32_0 = arith.constant 0 : i32
    return %c0_i32, %arg0 : i32, i32
  }
  func.func @transform_1(%arg0: i32) -> (i32, i32) {
    %c0_i32 = arith.constant 0 : i32
    %c0_i32_0 = arith.constant 0 : i32
    %c0_i32_1 = arith.constant 0 : i32
    return %c0_i32, %c0_i32_0 : i32, i32
  }
  func.func @transform_2(%arg0: i32) -> (i32, i32) {
    %c0_i32 = arith.constant 0 : i32
    %c0_i32_0 = arith.constant 0 : i32
    %c0_i32_1 = arith.constant 0 : i32
    return %c0_i32, %c0_i32_0 : i32, i32
  }
  func.func @transform_3(%arg0: i32) -> (i32, i32) {
    %c0_i32 = arith.constant 0 : i32
    %c0_i32_0 = arith.constant 0 : i32
    %c0_i32_1 = arith.constant 0 : i32
    return %c0_i32, %c0_i32_0 : i32, i32
  }
  func.func @transform_4(%arg0: i32) -> (i32, i32) {
    %c0_i32 = arith.constant 0 : i32
    %c0_i32_0 = arith.constant 0 : i32
    %c0_i32_1 = arith.constant 0 : i32
    return %c0_i32, %c0_i32_0 : i32, i32
  }
  func.func @transform_5(%arg0: i32) -> (i32, i32) {
    %c0_i32 = arith.constant 0 : i32
    %c0_i32_0 = arith.constant 0 : i32
    %c0_i32_1 = arith.constant 0 : i32
    return %c0_i32, %c0_i32_0 : i32, i32
  }
  func.func @transform_6(%arg0: i32) -> i32 {
    %c0_i32 = arith.constant 0 : i32
    %c0_i32_0 = arith.constant 0 : i32
    return %c0_i32 : i32
  }
  func.func @transform_7(%arg0: i32) -> (i32, i32) {
    %c0_i32 = arith.constant 0 : i32
    %c0_i32_0 = arith.constant 0 : i32
    return %arg0, %c0_i32 : i32, i32
  }
}

</mosaic_0001>

<bundles_post_ra>
// kernel: tpu_custom_call.1
= control target key start
LH: loop header
LB: loop body
LE: loop exit
PB: predicated region body
PF: predicated region fallthrough
CT: control target
= control target key end

     0   :  { %vm88_vm0 = vcmask 64512   ;;  %v956_v5 = vmov 0.0   ;;  %v957_v9 = vmov 0   ;;  %s1262_s0 = inlined_call_operand.vmem [shape: f32[8,512], index: 0, kind: input, shape index: {}]   ;;  %s1263_s1 = inlined_call_operand.vmem [shape: f32[64,8], index: 1, kind: input, shape index: {}]   ;;  %s1264_s2 = inlined_call_operand.vmem [shape: f32[64,1], index: 2, kind: input, shape index: {}]   ;;  %s1265_s3 = inlined_call_operand.vmem [shape: f32[64,64], index: 3, kind: input, shape index: {}]   ;;  %s1266_s4 = inlined_call_operand.vmem [shape: f32[64,1], index: 4, kind: input, shape index: {}]   ;;  %s1267_s5 = inlined_call_operand.vmem [shape: f32[64,1], index: 5, kind: input, shape index: {}]   ;;  %s1268_s6 = inlined_call_operand.<no memory space> [shape: f32[1], index: 6, kind: input, shape index: {}]   ;;  %s1269_s7 = inlined_call_operand.hbm [shape: f32[1,512], index: 7, kind: output, shape index: {}]  }
   0x1   :  { %v29_v0 = vld [vmem:[%s1262_s0 + $0x8] sm:$0xff]  ;;  %v31_v1 = vld [vmem:[%s1262_s0 + $0x18] sm:$0xff]  ;;  %v28_v2 = vld [vmem:[%s1262_s0] sm:$0xff]  ;;  %177 = vmatprep.mubr.f32.mxu0 %v956_v5  ;;  %290 = vmatprep.mubr.f32.mxu1 %v956_v5 }
   0x2   :  { %143 = vmatprep.subr.mxu0 %v29_v0  ;;  %256 = vmatprep.subr.mxu1 %v31_v1  ;;  %v30_v3 = vld [vmem:[%s1262_s0 + $0x10] sm:$0xff]  ;;  %v32_v4 = vld [vmem:[%s1263_s1] sm:$0xff]  ;;  %v47_v6 = vld [vmem:[%s1264_s2 + $0x38] sm:$0xff] }
   0x3   :  { %144 = vmatpush1.msra.mxu0 %v28_v2  ;;  %257 = vmatpush1.msra.mxu1 %v30_v3  ;;  %v45_v7 = vld [vmem:[%s1264_s2 + $0x28] sm:$0xff]  ;;  %v46_v10 = vld [vmem:[%s1264_s2 + $0x30] sm:$0xff]  ;;  %v44_v11 = vld [vmem:[%s1264_s2 + $0x20] sm:$0xff] }
   0x4   :  { %896 = vmatmul.mubr.msk.f32.vlgmr.msra.gmra.mxu0 %vm88_vm0, %v32_v4  ;;  %904 = vmatmul.mubr.msk.f32.vlgmr.msra.gmra.mxu1 %vm88_vm0, %v32_v4  ;;  %v33_v8 = vld [vmem:[%s1263_s1 + $0x8] sm:$0xff]  ;;  %v34_v12 = vld [vmem:[%s1263_s1 + $0x10] sm:$0xff]  ;;  %v43_v13 = vld [vmem:[%s1264_s2 + $0x18] sm:$0xff] }
   0x5   :  { %183 = vmatprep.mubr.f32.mxu0 %v956_v5  ;;  %296 = vmatprep.mubr.f32.mxu1 %v956_v5  ;;  %v42_v14 = vld [vmem:[%s1264_s2 + $0x10] sm:$0xff] }
   0x6   :  { %932 = vset.pattern.permute.xlu0 %v957_v9  ;;  %933 = vset.pattern.permute.xlu1 %v957_v9 }
   0x7   :  { %85 = vperm.xlu0 %932, %v47_v6   ;;  %75 = vperm.xlu1 %933, %v45_v7  }
   0x8   :  { %897 = vmatmul.mubr.msk.f32.gmra.mxu0 %vm88_vm0, %v33_v8  ;;  %905 = vmatmul.mubr.msk.f32.gmra.mxu1 %vm88_vm0, %v33_v8 }
   0x9   :  { %189 = vmatprep.mubr.f32.mxu0 %v956_v5  ;;  %302 = vmatprep.mubr.f32.mxu1 %v956_v5 }
   0xb   :  { %80 = vperm.xlu0 %932, %v46_v10   ;;  %70 = vperm.xlu1 %933, %v44_v11  }
   0xc   :  { %898 = vmatmul.mubr.msk.f32.gmra.mxu0 %vm88_vm0, %v34_v12  ;;  %906 = vmatmul.mubr.msk.f32.gmra.mxu1 %vm88_vm0, %v34_v12 }
   0xd   :  { %13 = vsyncpa [#allocation4], 0  ;;  %195 = vmatprep.mubr.f32.mxu0 %v956_v5  ;;  %308 = vmatprep.mubr.f32.mxu1 %v956_v5  ;;  %v35_v15 = vld [vmem:[%s1263_s1 + $0x18] sm:$0xff]  ;;  %v41_v16 = vld [vmem:[%s1264_s2 + $0x8] sm:$0xff]  ;;  %vm427_vm1 = vcmask 523264   ;;  %s959_s12 = smov [#allocation3]  }
   0xe   :  { %v40_v17 = vld [vmem:[%s1264_s2] sm:$0xff]  ;;  %v380_v20 = vld [vmem:[%s1266_s4 + $0x8] sm:$0xff]  ;;  %v381_v22 = vld [vmem:[%s1266_s4 + $0x10] sm:$0xff]  ;;  %s888_s0 = sshll.u32 %s959_s12, 4  ;;  %s889_s0 = int_to_ptr.vmem [resolvable:$true] %s888_s0 }
   0xf   :  { %65 = vperm.xlu0 %932, %v43_v13   ;;  %60 = vperm.xlu1 %933, %v42_v14   ;;  %v36_v18 = vld [vmem:[%s1263_s1 + $0x20] sm:$0xff]  ;;  %v37_v21 = vld [vmem:[%s1263_s1 + $0x28] sm:$0xff]  ;;  %v382_v23 = vld [vmem:[%s1266_s4 + $0x18] sm:$0xff]  ;;  %s934_s2 = scalar_lea.vmem %s889_s0, 64  ;;  %p939_p1 = scmp.lt.s32.totalorder %s889_s0, %s889_s0 }
  0x10   :  { %899 = vmatmul.mubr.msk.f32.gmra.mxu0 %vm88_vm0, %v35_v15  ;;  %907 = vmatmul.mubr.msk.f32.gmra.mxu1 %vm88_vm0, %v35_v15  ;;  %v379_v19 = vld [vmem:[%s1266_s4] sm:$0xff]  ;;  %v38_v24 = vld [vmem:[%s1263_s1 + $0x30] sm:$0xff]  ;;  %v711_v26 = vld [vmem:[%s1267_s5 + $0x8] sm:$0xff]  ;;  %p935_p0 = scmp.ne.s32.totalorder %s889_s0, %s934_s2  ;;  %p940_p2 = scmp.lt.s32.totalorder %s934_s2, %s934_s2 }
  0x11   :  { %201 = vmatprep.mubr.f32.mxu0 %v956_v5  ;;  %314 = vmatprep.mubr.f32.mxu1 %v956_v5  ;;  %v710_v25 = vld [vmem:[%s1267_s5] sm:$0xff]  ;;  %v39_v27 = vld [vmem:[%s1263_s1 + $0x38] sm:$0xff]  ;;  %v712_v29 = vld [vmem:[%s1267_s5 + $0x10] sm:$0xff] }
  0x12   :  { %v383_v28 = vld [vmem:[%s1266_s4 + $0x20] sm:$0xff]  ;;  %v384_v30 = vld [vmem:[%s1266_s4 + $0x28] sm:$0xff]  ;;  %v713_v31 = vld [vmem:[%s1267_s5 + $0x18] sm:$0xff]  ;;  %p941_p3 = por %p940_p2, %p939_p1 }
  0x13   :  { %55 = vperm.xlu0 %932, %v41_v16   ;;  %50 = vperm.xlu1 %933, %v40_v17   ;;  %v385_v32 = vld [vmem:[%s1266_s4 + $0x30] sm:$0xff]  ;;  %v714_v33 = vld [vmem:[%s1267_s5 + $0x20] sm:$0xff]  ;;  %v386_v34 = vld [vmem:[%s1266_s4 + $0x38] sm:$0xff] }
  0x14   :  { %900 = vmatmul.mubr.msk.f32.gmra.mxu0 %vm88_vm0, %v36_v18  ;;  %908 = vmatmul.mubr.msk.f32.gmra.mxu1 %vm88_vm0, %v36_v18  ;;  %v715_v35 = vld [vmem:[%s1267_s5 + $0x28] sm:$0xff]  ;;  %v716_v36 = vld [vmem:[%s1267_s5 + $0x30] sm:$0xff]  ;;  %v717_v37 = vld [vmem:[%s1267_s5 + $0x38] sm:$0xff]  ;;  %p942_p4 = pnand %p941_p3, %p935_p0 }
  0x15   :  { %207 = vmatprep.mubr.f32.mxu0 %v956_v5  ;;  %320 = vmatprep.mubr.f32.mxu1 %v956_v5 }
  0x17   :  { %389 = vperm.xlu0 %932, %v379_v19   ;;  %394 = vperm.xlu1 %933, %v380_v20  }
  0x18   :  { %901 = vmatmul.mubr.msk.f32.gmra.mxu0 %vm88_vm0, %v37_v21  ;;  %909 = vmatmul.mubr.msk.f32.gmra.mxu1 %vm88_vm0, %v37_v21 }
  0x19   :  { %213 = vmatprep.mubr.f32.mxu0 %v956_v5  ;;  %326 = vmatprep.mubr.f32.mxu1 %v956_v5 }
  0x1b   :  { %399 = vperm.xlu0 %932, %v381_v22   ;;  %404 = vperm.xlu1 %933, %v382_v23  }
  0x1c   :  { %902 = vmatmul.mubr.msk.f32.gmra.mxu0 %vm88_vm0, %v38_v24  ;;  %910 = vmatmul.mubr.msk.f32.gmra.mxu1 %vm88_vm0, %v38_v24 }
  0x1d   :  { %219 = vmatprep.mubr.f32.mxu0 %v956_v5  ;;  %332 = vmatprep.mubr.f32.mxu1 %v956_v5 }
  0x1f   :  { %720 = vperm.xlu0 %932, %v710_v25   ;;  %725 = vperm.xlu1 %933, %v711_v26  }
  0x20   :  { %903 = vmatmul.mubr.msk.f32.gmra.mxu0 %vm88_vm0, %v39_v27  ;;  %911 = vmatmul.mubr.msk.f32.gmra.mxu1 %vm88_vm0, %v39_v27 }
  0x21   :  { %516 = vmatprep.mubr.f32.mxu0 %v956_v5  ;;  %629 = vmatprep.mubr.f32.mxu1 %v956_v5 }
  0x23   :  { %409 = vperm.xlu0 %932, %v383_v28   ;;  %730 = vperm.xlu1 %933, %v712_v29  }
  0x27   :  { %414 = vperm.xlu0 %932, %v384_v30   ;;  %735 = vperm.xlu1 %933, %v713_v31  }
  0x2b   :  { %419 = vperm.xlu0 %932, %v385_v32   ;;  %740 = vperm.xlu1 %933, %v714_v33  }
  0x2f   :  { %424 = vperm.xlu0 %932, %v386_v34   ;;  %745 = vperm.xlu1 %933, %v715_v35  }
  0x33   :  { %750 = vperm.xlu0 %932, %v716_v36   ;;  %755 = vperm.xlu1 %933, %v717_v37  }
  0x82   :  { %v86_v60 = vpop.permute.xlu0 %85  ;;  %v76_v63 = vpop.permute.xlu1 %75 }
  0x86   :  { %v81_v4 = vpop.permute.xlu0 %80  ;;  %v71_v8 = vpop.permute.xlu1 %70 }
  0x8a   :  { %v66_v23 = vpop.permute.xlu0 %65  ;;  %v61_v28 = vpop.permute.xlu1 %60 }
  0xc4   :  { %v1142_v38 = vpop.f32.mrf.mxu0  ;;  %v1144_v39 = vpop.f32.mrf.mxu1 }
  0xc6   :  { %v1146_v40 = vpop.f32.mrf.mxu0  ;;  %v1148_v41 = vpop.f32.mrf.mxu1 }
  0xc8   :  { %v1150_v42 = vpop.f32.mrf.mxu0  ;;  %v1152_v43 = vpop.f32.mrf.mxu1 }
  0xca   :  { %v1154_v44 = vpop.f32.mrf.mxu0  ;;  %v1156_v45 = vpop.f32.mrf.mxu1 }
  0xcc   :  { %v1158_v46 = vpop.f32.mrf.mxu0  ;;  %v1160_v47 = vpop.f32.mrf.mxu1 }
  0xce   :  { %v1162_v48 = vpop.f32.mrf.mxu0  ;;  %v1164_v49 = vpop.f32.mrf.mxu1 }
  0xd0   :  { %v197_v50 = vpop.f32.mrf.mxu0  ;;  %v310_v51 = vpop.f32.mrf.mxu1 }
  0xd2   :  { %v199_v52 = vpop.f32.mrf.mxu0  ;;  %v312_v53 = vpop.f32.mrf.mxu1 }
  0xd3   :  { %v200_v37 = vadd.f32 %v199_v52, %v66_v23  ;;  %v56_v52 = vpop.permute.xlu0 %55 }
  0xd4   :  { %v203_v54 = vpop.f32.mrf.mxu0  ;;  %v316_v55 = vpop.f32.mrf.mxu1 }
  0xd5   :  { %v204_v33 = vadd.f32 %v203_v54, %v71_v8  ;;  %v317_v34 = vadd.f32 %v316_v55, %v71_v8  ;;  %v307_v54 = vadd.f32 %v1164_v49, %v61_v28 }
  0xd6   :  { %v205_v56 = vpop.f32.mrf.mxu0  ;;  %v318_v57 = vpop.f32.mrf.mxu1 }
  0xd7   :  { %v206_v29 = vadd.f32 %v205_v56, %v71_v8  ;;  %v319_v30 = vadd.f32 %v318_v57, %v71_v8 }
  0xd8   :  { %v209_v58 = vpop.f32.mrf.mxu0  ;;  %v322_v59 = vpop.f32.mrf.mxu1 }
  0xd9   :  { %v210_v24 = vadd.f32 %v209_v58, %v76_v63  ;;  %v323_v25 = vadd.f32 %v322_v59, %v76_v63  ;;  %v198_v59 = vadd.f32 %v197_v50, %v66_v23  ;;  %v356_v55 = vmax.f32 %v206_v29, 0.0 }
  0xda   :  { %v211_v61 = vpop.f32.mrf.mxu0  ;;  %v324_v62 = vpop.f32.mrf.mxu1  ;;  %v357_v50 = vmax.f32 %v317_v34, 0.0 }
  0xdb   :  { %v212_v19 = vadd.f32 %v211_v61, %v76_v63  ;;  %v325_v20 = vadd.f32 %v324_v62, %v76_v63  ;;  %v311_v62 = vadd.f32 %v310_v51, %v66_v23  ;;  %v359_v56 = vmax.f32 %v210_v24, 0.0  ;;  %v51_v51 = vpop.permute.xlu1 %50  ;;  %v390_v24 = vpop.permute.xlu0 %389 }
  0xdc   :  { %v215_v0 = vpop.f32.mrf.mxu0  ;;  %v328_v1 = vpop.f32.mrf.mxu1  ;;  %v361_v57 = vmax.f32 %v323_v25, 0.0  ;;  %v194_v63 = vadd.f32 %v1162_v48, %v61_v28  ;;  %v301_v48 = vadd.f32 %v1156_v45, %v56_v52  ;;  %v180_v45 = vadd.f32 %v1142_v38, %v51_v51 }
  0xdd   :  { %v216_v17 = vadd.f32 %v215_v0, %v81_v4  ;;  %v329_v18 = vadd.f32 %v328_v1, %v81_v4  ;;  %v360_v61 = vmax.f32 %v212_v19, 0.0  ;;  %v362_v58 = vmax.f32 %v325_v20, 0.0  ;;  %v374_v19 = vld [vmem:[%s1265_s3 + $0x18] sm:$0xff]  ;;  %v375_v20 = vld [vmem:[%s1265_s3 + $0x20] sm:$0xff] }
  0xde   :  { %v217_v2 = vpop.f32.mrf.mxu0  ;;  %v330_v3 = vpop.f32.mrf.mxu1  ;;  %v358_v0 = vmax.f32 %v319_v30, 0.0  ;;  %v305_v1 = vadd.f32 %v1160_v47, %v61_v28  ;;  %v353_v8 = vmax.f32 %v311_v62, 0.0  ;;  %v182_v47 = vadd.f32 %v1146_v40, %v51_v51 }
  0xdf   :  { %v218_v13 = vadd.f32 %v217_v2, %v81_v4  ;;  %v331_v14 = vadd.f32 %v330_v3, %v81_v4  ;;  %v363_v35 = vmax.f32 %v216_v17, 0.0  ;;  %v365_v36 = vmax.f32 %v329_v18, 0.0  ;;  %v372_v17 = vld [vmem:[%s1265_s3 + $0x8] sm:$0xff]  ;;  %v373_v18 = vld [vmem:[%s1265_s3 + $0x10] sm:$0xff]  ;;  %v395_v25 = vpop.permute.xlu1 %394 }
  0xe0   :  { %v221_v6 = vpop.f32.mrf.mxu0  ;;  %v334_v7 = vpop.f32.mrf.mxu1  ;;  %v355_v2 = vmax.f32 %v204_v33, 0.0  ;;  %v188_v3 = vadd.f32 %v1154_v44, %v56_v52  ;;  %v352_v4 = vmax.f32 %v200_v37, 0.0  ;;  %v350_v44 = vmax.f32 %v307_v54, 0.0 }
  0xe1   :  { %v222_v9 = vadd.f32 %v221_v6, %v86_v60  ;;  %v335_v10 = vadd.f32 %v334_v7, %v86_v60  ;;  %v364_v31 = vmax.f32 %v218_v13, 0.0  ;;  %v366_v32 = vmax.f32 %v331_v14, 0.0 }
  0xe2   :  { %v223_v11 = vpop.f32.mrf.mxu0  ;;  %v336_v12 = vpop.f32.mrf.mxu1  ;;  %v186_v6 = vadd.f32 %v1150_v42, %v56_v52  ;;  %v299_v7 = vadd.f32 %v1152_v43, %v56_v52  ;;  %v349_v42 = vmax.f32 %v305_v1, 0.0  ;;  %v344_v43 = vmax.f32 %v188_v3, 0.0 }
  0xe3   :  { %v224_v15 = vadd.f32 %v223_v11, %v86_v60  ;;  %v337_v16 = vadd.f32 %v336_v12, %v86_v60  ;;  %v367_v26 = vmax.f32 %v222_v9, 0.0  ;;  %v369_v27 = vmax.f32 %v335_v10, 0.0 }
  0xe4   :  { %v313_v60 = vadd.f32 %v312_v53, %v66_v23  ;;  %v192_v53 = vadd.f32 %v1158_v46, %v61_v28  ;;  %v351_v46 = vmax.f32 %v198_v59, 0.0  ;;  %v295_v9 = vadd.f32 %v1148_v41, %v51_v51  ;;  %v378_v23 = vld [vmem:[%s1265_s3 + $0x38] sm:$0xff] }
  0xe5   :  { %v368_v21 = vmax.f32 %v224_v15, 0.0  ;;  %v370_v22 = vmax.f32 %v337_v16, 0.0  ;;  %v348_v10 = vmax.f32 %v194_v63, 0.0  ;;  %v293_v11 = vadd.f32 %v1144_v39, %v51_v51  ;;  %v371_v39 = vld [vmem:[%s1265_s3] sm:$0xff] }
  0xe6   :  { %v354_v49 = vmax.f32 %v313_v60, 0.0  ;;  %v347_v12 = vmax.f32 %v192_v53, 0.0  ;;  %v346_v13 = vmax.f32 %v301_v48, 0.0  ;;  %v343_v14 = vmax.f32 %v186_v6, 0.0 }
  0xe7   :  { %468 = vmatprep.subr.mxu0 %v368_v21  ;;  %581 = vmatprep.subr.mxu1 %v370_v22  ;;  %v345_v40 = vmax.f32 %v299_v7, 0.0  ;;  %v340_v41 = vmax.f32 %v182_v47, 0.0  ;;  %v342_v15 = vmax.f32 %v295_v9, 0.0  ;;  %v339_v16 = vmax.f32 %v180_v45, 0.0  ;;  %v376_v21 = vld [vmem:[%s1265_s3 + $0x28] sm:$0xff]  ;;  %v377_v22 = vld [vmem:[%s1265_s3 + $0x30] sm:$0xff] }
  0xe8   :  { %469 = vmatpush1.msra.mxu0 %v367_v26  ;;  %582 = vmatpush1.msra.mxu1 %v369_v27  ;;  %v341_v38 = vmax.f32 %v293_v11, 0.0  ;;  %v400_v26 = vpop.permute.xlu0 %399  ;;  %v1232_v27 = vpop.permute.xlu1 %404 }
  0xe9   :  { %470 = vmatprep.subr.mxu0 %v364_v31  ;;  %583 = vmatprep.subr.mxu1 %v366_v32 }
  0xea   :  { %471 = vmatpush1.msra.mxu0 %v363_v35  ;;  %584 = vmatpush1.msra.mxu1 %v365_v36 }
  0xeb   :  { %472 = vmatprep.subr.mxu0 %v360_v61  ;;  %585 = vmatprep.subr.mxu1 %v362_v58 }
  0xec   :  { %473 = vmatpush1.msra.mxu0 %v359_v56  ;;  %586 = vmatpush1.msra.mxu1 %v361_v57  ;;  %v721_v28 = vpop.permute.xlu0 %720  ;;  %v726_v31 = vpop.permute.xlu1 %725 }
  0xed   :  { %474 = vmatprep.subr.mxu0 %v356_v55  ;;  %587 = vmatprep.subr.mxu1 %v358_v0 }
  0xee   :  { %475 = vmatpush1.msra.mxu0 %v355_v2  ;;  %588 = vmatpush1.msra.mxu1 %v357_v50 }
  0xef   :  { %476 = vmatprep.subr.mxu0 %v352_v4  ;;  %589 = vmatprep.subr.mxu1 %v354_v49 }
  0xf0   :  { %477 = vmatpush1.msra.mxu0 %v351_v46  ;;  %590 = vmatpush1.msra.mxu1 %v353_v8  ;;  %v1234_v35 = vpop.permute.xlu0 %409  ;;  %v731_v54 = vpop.permute.xlu1 %730 }
  0xf1   :  { %478 = vmatprep.subr.mxu0 %v348_v10  ;;  %591 = vmatprep.subr.mxu1 %v350_v44 }
  0xf2   :  { %479 = vmatpush1.msra.mxu0 %v347_v12  ;;  %592 = vmatpush1.msra.mxu1 %v349_v42 }
  0xf3   :  { %480 = vmatprep.subr.mxu0 %v344_v43  ;;  %593 = vmatprep.subr.mxu1 %v346_v13 }
  0xf4   :  { %481 = vmatpush1.msra.mxu0 %v343_v14  ;;  %594 = vmatpush1.msra.mxu1 %v345_v40  ;;  %v1236_v3 = vpop.permute.xlu0 %414  ;;  %v736_v40 = vpop.permute.xlu1 %735 }
  0xf5   :  { %482 = vmatprep.subr.mxu0 %v340_v41  ;;  %595 = vmatprep.subr.mxu1 %v342_v15 }
  0xf6   :  { %483 = vmatpush1.msra.mxu0 %v339_v16  ;;  %596 = vmatpush1.msra.mxu1 %v341_v38 }
  0xf7   :  { %912 = vmatmul.mubr.msk.f32.vlgmr.msra.gmra.mxu0 %vm427_vm1, %v371_v39  ;;  %920 = vmatmul.mubr.msk.f32.vlgmr.msra.gmra.mxu1 %vm427_vm1, %v371_v39 }
  0xf8   :  { %522 = vmatprep.mubr.f32.mxu0 %v956_v5  ;;  %635 = vmatprep.mubr.f32.mxu1 %v956_v5 }
  0xfb   :  { %913 = vmatmul.mubr.msk.f32.gmra.mxu0 %vm427_vm1, %v372_v17  ;;  %921 = vmatmul.mubr.msk.f32.gmra.mxu1 %vm427_vm1, %v372_v17 }
  0xfc   :  { %528 = vmatprep.mubr.f32.mxu0 %v956_v5  ;;  %641 = vmatprep.mubr.f32.mxu1 %v956_v5 }
  0xff   :  { %914 = vmatmul.mubr.msk.f32.gmra.mxu0 %vm427_vm1, %v373_v18  ;;  %922 = vmatmul.mubr.msk.f32.gmra.mxu1 %vm427_vm1, %v373_v18 }
 0x100   :  { %534 = vmatprep.mubr.f32.mxu0 %v956_v5  ;;  %647 = vmatprep.mubr.f32.mxu1 %v956_v5 }
 0x103   :  { %915 = vmatmul.mubr.msk.f32.gmra.mxu0 %vm427_vm1, %v374_v19  ;;  %923 = vmatmul.mubr.msk.f32.gmra.mxu1 %vm427_vm1, %v374_v19 }
 0x104   :  { %540 = vmatprep.mubr.f32.mxu0 %v956_v5  ;;  %653 = vmatprep.mubr.f32.mxu1 %v956_v5 }
 0x107   :  { %916 = vmatmul.mubr.msk.f32.gmra.mxu0 %vm427_vm1, %v375_v20  ;;  %924 = vmatmul.mubr.msk.f32.gmra.mxu1 %vm427_vm1, %v375_v20 }
 0x108   :  { %546 = vmatprep.mubr.f32.mxu0 %v956_v5  ;;  %659 = vmatprep.mubr.f32.mxu1 %v956_v5 }
 0x10b   :  { %917 = vmatmul.mubr.msk.f32.gmra.mxu0 %vm427_vm1, %v376_v21  ;;  %925 = vmatmul.mubr.msk.f32.gmra.mxu1 %vm427_vm1, %v376_v21 }
 0x10c   :  { %552 = vmatprep.mubr.f32.mxu0 %v956_v5  ;;  %665 = vmatprep.mubr.f32.mxu1 %v956_v5 }
 0x10f   :  { %918 = vmatmul.mubr.msk.f32.gmra.mxu0 %vm427_vm1, %v377_v22  ;;  %926 = vmatmul.mubr.msk.f32.gmra.mxu1 %vm427_vm1, %v377_v22  ;;  %v1240_v22 = vpop.permute.xlu0 %419 }
 0x110   :  { %558 = vmatprep.mubr.f32.mxu0 %v956_v5  ;;  %671 = vmatprep.mubr.f32.mxu1 %v956_v5 }
 0x113   :  { %919 = vmatmul.mubr.msk.f32.gmra.mxu0 %vm427_vm1, %v378_v23  ;;  %927 = vmatmul.mubr.msk.f32.gmra.mxu1 %vm427_vm1, %v378_v23 }
 0x1b7   :  { %v518_v29 = vpop.f32.mrf.mxu0  ;;  %v631_v30 = vpop.f32.mrf.mxu1 }
 0x1b8   :  { %v519_v32 = vadd.f32 %v518_v29, %v390_v24  ;;  %v632_v33 = vadd.f32 %v631_v30, %v390_v24 }
 0x1b9   :  { %v520_v5 = vpop.f32.mrf.mxu0  ;;  %v633_v34 = vpop.f32.mrf.mxu1 }
 0x1ba   :  { %v521_v36 = vadd.f32 %v520_v5, %v390_v24  ;;  %v634_v37 = vadd.f32 %v633_v34, %v390_v24  ;;  %v678_v58 = vmax.f32 %v519_v32, 0.0  ;;  %v680_v59 = vmax.f32 %v632_v33, 0.0 }
 0x1bb   :  { %v524_v60 = vpop.f32.mrf.mxu0  ;;  %v637_v61 = vpop.f32.mrf.mxu1 }
 0x1bc   :  { %v525_v62 = vadd.f32 %v524_v60, %v395_v25  ;;  %v638_v56 = vadd.f32 %v637_v61, %v395_v25  ;;  %v679_v52 = vmax.f32 %v521_v36, 0.0  ;;  %v681_v53 = vmax.f32 %v634_v37, 0.0 }
 0x1bd   :  { %v526_v57 = vpop.f32.mrf.mxu0  ;;  %v639_v63 = vpop.f32.mrf.mxu1  ;;  %v758_v7 = vmul.f32 %v721_v28, %v678_v58  ;;  %v760_v46 = vmul.f32 %v721_v28, %v680_v59 }
 0x1be   :  { %v527_v55 = vadd.f32 %v526_v57, %v395_v25  ;;  %v640_v0 = vadd.f32 %v639_v63, %v395_v25  ;;  %v682_v1 = vmax.f32 %v525_v62, 0.0  ;;  %v684_v2 = vmax.f32 %v638_v56, 0.0  ;;  %v741_v57 = vpop.permute.xlu1 %740 }
 0x1bf   :  { %v530_v50 = vpop.f32.mrf.mxu0  ;;  %v643_v51 = vpop.f32.mrf.mxu1  ;;  %v759_v11 = vmul.f32 %v721_v28, %v679_v52  ;;  %v761_v12 = vmul.f32 %v721_v28, %v681_v53 }
 0x1c0   :  { %v683_v48 = vmax.f32 %v527_v55, 0.0  ;;  %v685_v4 = vmax.f32 %v640_v0, 0.0  ;;  %v531_v49 = vadd.f32 %v530_v50, %v400_v26  ;;  %v644_v6 = vadd.f32 %v643_v51, %v400_v26  ;;  %v425_v51 = vpop.permute.xlu0 %424 }
 0x1c1   :  { %v532_v8 = vpop.f32.mrf.mxu0  ;;  %v645_v47 = vpop.f32.mrf.mxu1  ;;  %v762_v9 = vmul.f32 %v726_v31, %v682_v1  ;;  %v764_v10 = vmul.f32 %v726_v31, %v684_v2 }
 0x1c2   :  { %v686_v44 = vmax.f32 %v531_v49, 0.0  ;;  %v688_v45 = vmax.f32 %v644_v6, 0.0  ;;  %v533_v42 = vadd.f32 %v532_v8, %v400_v26  ;;  %v646_v43 = vadd.f32 %v645_v47, %v400_v26 }
 0x1c3   :  { %v536_v13 = vpop.f32.mrf.mxu0  ;;  %v649_v14 = vpop.f32.mrf.mxu1  ;;  %v763_v41 = vmul.f32 %v726_v31, %v683_v48  ;;  %v765_v15 = vmul.f32 %v726_v31, %v685_v4  ;;  %v790_v23 = vadd.f32 %v762_v9, %v758_v7  ;;  %v816_v24 = vadd.f32 %v764_v10, %v760_v46 }
 0x1c4   :  { %v766_v16 = vmul.f32 %v731_v54, %v686_v44  ;;  %v768_v38 = vmul.f32 %v731_v54, %v688_v45  ;;  %v687_v39 = vmax.f32 %v533_v42, 0.0  ;;  %v689_v17 = vmax.f32 %v646_v43, 0.0 }
 0x1c5   :  { %v537_v18 = vadd.f32 %v536_v13, %v1232_v27  ;;  %v650_v19 = vadd.f32 %v649_v14, %v1232_v27  ;;  %v538_v20 = vpop.f32.mrf.mxu0  ;;  %v651_v21 = vpop.f32.mrf.mxu1  ;;  %v803_v60 = vadd.f32 %v763_v41, %v759_v11  ;;  %v829_v61 = vadd.f32 %v765_v15, %v761_v12 }
 0x1c6   :  { %v539_v25 = vadd.f32 %v538_v20, %v1232_v27  ;;  %v652_v26 = vadd.f32 %v651_v21, %v1232_v27  ;;  %v767_v28 = vmul.f32 %v731_v54, %v687_v39  ;;  %v769_v29 = vmul.f32 %v731_v54, %v689_v17  ;;  %v746_v41 = vpop.permute.xlu1 %745 }
 0x1c7   :  { %v690_v30 = vmax.f32 %v537_v18, 0.0  ;;  %v692_v31 = vmax.f32 %v650_v19, 0.0  ;;  %v542_v32 = vpop.f32.mrf.mxu0  ;;  %v655_v33 = vpop.f32.mrf.mxu1  ;;  %v791_v58 = vadd.f32 %v790_v23, %v766_v16  ;;  %v817_v59 = vadd.f32 %v816_v24, %v768_v38 }
 0x1c8   :  { %v691_v5 = vmax.f32 %v539_v25, 0.0  ;;  %v693_v34 = vmax.f32 %v652_v26, 0.0  ;;  %v543_v36 = vadd.f32 %v542_v32, %v1234_v35  ;;  %v656_v37 = vadd.f32 %v655_v33, %v1234_v35 }
 0x1c9   :  { %v544_v62 = vpop.f32.mrf.mxu0  ;;  %v657_v56 = vpop.f32.mrf.mxu1  ;;  %v770_v27 = vmul.f32 %v736_v40, %v690_v30  ;;  %v772_v63 = vmul.f32 %v736_v40, %v692_v31  ;;  %v804_v0 = vadd.f32 %v803_v60, %v767_v28  ;;  %v830_v52 = vadd.f32 %v829_v61, %v769_v29 }
 0x1ca   :  { %v694_v54 = vmax.f32 %v543_v36, 0.0  ;;  %v696_v55 = vmax.f32 %v656_v37, 0.0  ;;  %v545_v53 = vadd.f32 %v544_v62, %v1234_v35  ;;  %v658_v1 = vadd.f32 %v657_v56, %v1234_v35 }
 0x1cb   :  { %v548_v2 = vpop.f32.mrf.mxu0  ;;  %v661_v50 = vpop.f32.mrf.mxu1  ;;  %v771_v48 = vmul.f32 %v736_v40, %v691_v5  ;;  %v773_v4 = vmul.f32 %v736_v40, %v693_v34  ;;  %v792_v44 = vadd.f32 %v791_v58, %v770_v27  ;;  %v818_v45 = vadd.f32 %v817_v59, %v772_v63 }
 0x1cc   :  { %v774_v49 = vmul.f32 %v741_v57, %v694_v54  ;;  %v776_v6 = vmul.f32 %v741_v57, %v696_v55  ;;  %v695_v7 = vmax.f32 %v545_v53, 0.0  ;;  %v697_v46 = vmax.f32 %v658_v1, 0.0  ;;  %v756_v1 = vpop.permute.xlu1 %755 }
 0x1cd   :  { %v549_v8 = vadd.f32 %v548_v2, %v1236_v3  ;;  %v662_v47 = vadd.f32 %v661_v50, %v1236_v3  ;;  %v550_v9 = vpop.f32.mrf.mxu0  ;;  %v663_v10 = vpop.f32.mrf.mxu1  ;;  %v805_v17 = vadd.f32 %v804_v0, %v771_v48  ;;  %v831_v18 = vadd.f32 %v830_v52, %v773_v4 }
 0x1ce   :  { %v551_v11 = vadd.f32 %v550_v9, %v1236_v3  ;;  %v664_v35 = vadd.f32 %v663_v10, %v1236_v3  ;;  %v775_v12 = vmul.f32 %v741_v57, %v695_v7  ;;  %v777_v42 = vmul.f32 %v741_v57, %v697_v46  ;;  %v751_v3 = vpop.permute.xlu0 %750 }
 0x1cf   :  { %v698_v43 = vmax.f32 %v549_v8, 0.0  ;;  %v700_v13 = vmax.f32 %v662_v47, 0.0  ;;  %v554_v14 = vpop.f32.mrf.mxu0  ;;  %v667_v40 = vpop.f32.mrf.mxu1  ;;  %v793_v19 = vadd.f32 %v792_v44, %v774_v49  ;;  %v819_v20 = vadd.f32 %v818_v45, %v776_v6 }
 0x1d0   :  { %v699_v15 = vmax.f32 %v551_v11, 0.0  ;;  %v701_v16 = vmax.f32 %v664_v35, 0.0  ;;  %v555_v38 = vadd.f32 %v554_v14, %v1240_v22  ;;  %v668_v39 = vadd.f32 %v667_v40, %v1240_v22 }
 0x1d1   :  { %v556_v21 = vpop.f32.mrf.mxu0  ;;  %v669_v23 = vpop.f32.mrf.mxu1  ;;  %v778_v24 = vmul.f32 %v746_v41, %v698_v43  ;;  %v780_v25 = vmul.f32 %v746_v41, %v700_v13  ;;  %v806_v29 = vadd.f32 %v805_v17, %v775_v12  ;;  %v832_v30 = vadd.f32 %v831_v18, %v777_v42 }
 0x1d2   :  { %v702_v26 = vmax.f32 %v555_v38, 0.0  ;;  %v704_v28 = vmax.f32 %v668_v39, 0.0  ;;  %v557_v31 = vadd.f32 %v556_v21, %v1240_v22  ;;  %v670_v32 = vadd.f32 %v669_v23, %v1240_v22 }
 0x1d3   :  { %v560_v33 = vpop.f32.mrf.mxu0  ;;  %v673_v5 = vpop.f32.mrf.mxu1  ;;  %v779_v34 = vmul.f32 %v746_v41, %v699_v15  ;;  %v781_v36 = vmul.f32 %v746_v41, %v701_v16  ;;  %v794_v27 = vadd.f32 %v793_v19, %v778_v24  ;;  %v820_v63 = vadd.f32 %v819_v20, %v780_v25 }
 0x1d4   :  { %v782_v37 = vmul.f32 %v751_v3, %v702_v26  ;;  %v784_v60 = vmul.f32 %v751_v3, %v704_v28  ;;  %v703_v61 = vmax.f32 %v557_v31, 0.0  ;;  %v705_v58 = vmax.f32 %v670_v32, 0.0 }
 0x1d5   :  { %v561_v59 = vadd.f32 %v560_v33, %v425_v51  ;;  %v674_v62 = vadd.f32 %v673_v5, %v425_v51  ;;  %v562_v56 = vpop.f32.mrf.mxu0  ;;  %v675_v57 = vpop.f32.mrf.mxu1  ;;  %v807_v2 = vadd.f32 %v806_v29, %v779_v34  ;;  %v833_v50 = vadd.f32 %v832_v30, %v781_v36 }
 0x1d6   :  { %v563_v54 = vadd.f32 %v562_v56, %v425_v51  ;;  %v676_v55 = vadd.f32 %v675_v57, %v425_v51  ;;  %v783_v0 = vmul.f32 %v751_v3, %v703_v61  ;;  %v785_v52 = vmul.f32 %v751_v3, %v705_v58 }
 0x1d7   :  { %v706_v53 = vmax.f32 %v561_v59, 0.0  ;;  %v708_v22 = vmax.f32 %v674_v62, 0.0  ;;  %v795_v49 = vadd.f32 %v794_v27, %v782_v37  ;;  %v821_v6 = vadd.f32 %v820_v63, %v784_v60 }
 0x1d8   :  { %v707_v48 = vmax.f32 %v563_v54, 0.0  ;;  %v709_v4 = vmax.f32 %v676_v55, 0.0  ;;  %v808_v8 = vadd.f32 %v807_v2, %v783_v0  ;;  %v834_v47 = vadd.f32 %v833_v50, %v785_v52 }
 0x1d9   :  { %v786_v7 = vmul.f32 %v756_v1, %v706_v53  ;;  %v788_v46 = vmul.f32 %v756_v1, %v708_v22  ;;  %v958_v38 = vmov 1966171168   ;;  %v857_v17 = vlaneseq }
 0x1da   :  { %v787_v9 = vmul.f32 %v756_v1, %v707_v48  ;;  %v789_v10 = vmul.f32 %v756_v1, %v709_v4  ;;  %v855_v39 = vunpack.c.l.s4 %v958_v38  ;;  %v843_v33 = vstv %s1268_s6 }
 0x1db   :  { %v796_v44 = vadd.f32 %v795_v49, %v786_v7  ;;  %v822_v45 = vadd.f32 %v821_v6, %v788_v46  ;;  %v858_v28 = vshrl.u32 %v857_v17, 7  ;;  %vm879_vm2 = vcmp.lt.s32.totalorder %v857_v17, 512 }
 0x1dc   :  { %v809_v51 = vadd.f32 %v808_v8, %v787_v9  ;;  %v835_v11 = vadd.f32 %v834_v47, %v789_v10  ;;  %v856_v26 = vunpack.c.0.s8 %v855_v39 }
 0x1dd   :  { %v797_v35 = vrot.slane %v796_v44, 4  ;;  %v823_v12 = vrot.slane %v822_v45, 4 }
 0x1de   :  { %v810_v42 = vrot.slane %v809_v51, 4  ;;  %v836_v43 = vrot.slane %v835_v11, 4  ;;  %v859_v36 = vsub.s32 %v856_v26, %v858_v28 }
 0x1df   :  { %v798_v13 = vadd.f32 %v797_v35, %v796_v44  ;;  %v824_v14 = vadd.f32 %v823_v12, %v822_v45 }
 0x1e0   :  { %v811_v40 = vadd.f32 %v810_v42, %v809_v51  ;;  %v837_v41 = vadd.f32 %v836_v43, %v835_v11 }
 0x1e1   :  { %v799_v15 = vrot.slane %v798_v13, 2  ;;  %v825_v16 = vrot.slane %v824_v14, 2 }
 0x1e2   :  { %v812_v18 = vrot.slane %v811_v40, 2  ;;  %v838_v19 = vrot.slane %v837_v41, 2 }
 0x1e3   :  { %v800_v20 = vadd.f32 %v799_v15, %v798_v13  ;;  %v826_v21 = vadd.f32 %v825_v16, %v824_v14 }
 0x1e4   :  { %v813_v23 = vadd.f32 %v812_v18, %v811_v40  ;;  %v839_v3 = vadd.f32 %v838_v19, %v837_v41 }
 0x1e5   :  { %v801_v24 = vrot.slane %v800_v20, 1  ;;  %v827_v25 = vrot.slane %v826_v21, 1 }
 0x1e6   :  { %v814_v29 = vrot.slane %v813_v23, 1  ;;  %v840_v30 = vrot.slane %v839_v3, 1 }
 0x1e7   :  { %v802_v31 = vadd.f32 %v801_v24, %v800_v20  ;;  %v828_v32 = vadd.f32 %v827_v25, %v826_v21 }
 0x1e8   :  { %v815_v5 = vadd.f32 %v814_v29, %v813_v23  ;;  %v841_v34 = vadd.f32 %v840_v30, %v839_v3 }
 0x1e9   :  { %v844_v37 = vadd.f32 %v843_v33, %v802_v31  ;;  %v846_v61 = vadd.f32 %v843_v33, %v828_v32 }
 0x1ea   :  { %v845_v60 = vadd.f32 %v843_v33, %v815_v5  ;;  %v847_v58 = vadd.f32 %v843_v33, %v841_v34 }
 0x1ec   :  { %v852_v59 = vcombine.low %v844_v37, %v845_v60  ;;  %v853_v62 = vcombine.low %v846_v61, %v847_v58 }
 0x1ee   :  { %v860_v56 = vrot.slane %v852_v59, %v859_v36  ;;  %v867_v57 = vrot.slane %v853_v62, %v859_v36 }
 0x1f0   :  { %v868_v27 = vcombine.low %v860_v56, %v867_v57 }
 0x1f2   :  { %v875_v63 = vrot.slane %v868_v27, %v859_v36 }
 0x1f4   :  { %881 = vst.msk [vmem:[#allocation3] sm:$0xf] %vm879_vm2, %v875_v63 }
 0x1f5   :  { %945 = shalt.err (!%p942_p4)
}
 0x1f6   :  { %891 = dma.vmem_to_hbm [thread:$0]  %s889_s0, 64, %s1269_s7, [#allocation4]  }
 0x1f7   :  { %954 = dma.done.wait [#allocation4], 64  }
 0x1f8   :  { %955 = vsyncadd [#allocation4], 4294967232 }
 0x1f9   :  { %895 = vsyncpa [#allocation4], 1 }

</bundles_post_ra>
